<compile_context>
chip_gen: v6e
topology: v6e:2x2x1
jax: 0.10.0
libtpu: 0.0.40
codegen_flags: <defaults>
</compile_context>

<pallas_src>
import jax
import jax.numpy as jnp
from jax.experimental import pallas as pl
from jax.experimental.pallas import tpu as pltpu

C1 = 0.01 ** 2
C2 = 0.03 ** 2


def ssim_kernel(x_ref, y_ref, o_ref):
    # x_ref / y_ref / o_ref: (Bt, H, W) tiles in VMEM (unpadded planes).
    Bt, H, W = x_ref.shape

    x = x_ref[...].astype(jnp.float32)
    y = y_ref[...].astype(jnp.float32)

    # Edge masks, built once and shared by all five pools.
    row = jax.lax.broadcasted_iota(jnp.int32, (1, H, W), 1)
    col = jax.lax.broadcasted_iota(jnp.int32, (1, H, W), 2)
    top, bot = row == 0, row == H - 1
    lef, rig = col == 0, col == W - 1

    def pool3(a):
        """3x3 avg pool, stride 1, ReflectionPad2d(1) semantics, separable.

        Interior taps come from XLU rolls (no concat halo copies); the edge
        rows / columns are rebuilt exactly from 1-row / 1-col slices, so the
        result does not depend on the roll wrap direction.
        """
        # Vertical (sublane / H axis) 3-tap reflect-sum.
        up = pltpu.roll(a, shift=1, axis=1)
        dn = pltpu.roll(a, shift=H - 1, axis=1)
        v = up + a + dn
        v = jnp.where(top, a[:, 0:1, :] + 2.0 * a[:, 1:2, :], v)
        v = jnp.where(bot, a[:, H - 1:H, :] + 2.0 * a[:, H - 2:H - 1, :], v)
        # Horizontal (lane / W axis) 3-tap reflect-sum.
        le = pltpu.roll(v, shift=1, axis=2)
        ri = pltpu.roll(v, shift=W - 1, axis=2)
        s = le + v + ri
        s = jnp.where(lef, v[:, :, 0:1] + 2.0 * v[:, :, 1:2], s)
        s = jnp.where(rig, v[:, :, W - 1:W] + 2.0 * v[:, :, W - 2:W - 1], s)
        return s * (1.0 / 9.0)

    mu_x = pool3(x)
    mu_y = pool3(y)
    mu_xx = mu_x * mu_x
    mu_yy = mu_y * mu_y
    mu_xy = mu_x * mu_y

    sigma_x = pool3(x * x) - mu_xx
    sigma_y = pool3(y * y) - mu_yy
    sigma_xy = pool3(x * y) - mu_xy

    ssim_n = (2.0 * mu_xy + C1) * (2.0 * sigma_xy + C2)
    ssim_d = (mu_xx + mu_yy + C1) * (sigma_x + sigma_y + C2)

    # EUP approx reciprocal + one Newton step (rel. err ~1e-7 << 1e-5 tol).
    # ssim_d >= C1*C2 > 0, so no divide-by-zero hazard.
    inv_d = pl.reciprocal(ssim_d, approx=True)
    inv_d = inv_d * (2.0 - ssim_d * inv_d)

    out = jnp.clip((1.0 - ssim_n * inv_d) * 0.5, 0.0, 1.0)
    o_ref[...] = out.astype(o_ref.dtype)


def _vmem_capacity_bytes():
    try:
        cap = getattr(pltpu.get_tpu_info(), "vmem_capacity_bytes", None)
        if cap:
            return int(cap)
    except Exception:
        pass
    return 64 << 20  # conservative fallback (v7x per-TensorCore VMEM)


def _largest_divisor_leq(n, cap):
    cap = max(1, min(int(cap), n))
    for d in range(cap, 0, -1):
        if n % d == 0:
            return d
    return 1


def _pick_tiling(B, H, W, io_itemsize):
    """Planes per grid step + explicit scoped-VMEM limit for this kernel."""
    vmem_cap = _vmem_capacity_bytes()
    vmem_limit = min(vmem_cap * 3 // 4, 96 << 20)   # 48 MiB v7x, 96 MiB v5e/v6e
    # Per batched plane: double-buffered I/O (2 in + 1 out) in the I/O dtype
    # plus ~14 live f32 plane-sized intermediates inside the kernel.
    per_plane = 2 * 3 * H * W * io_itemsize + 14 * H * W * 4
    bt = max(1, int(vmem_limit * 0.85) // per_plane)
    # Keep >= ~8 grid steps when B allows: hides prologue/epilogue DMAs and
    # gives both v7x TensorCores >= 4 steps each under "parallel" semantics.
    if B >= 8:
        bt = min(bt, pl.cdiv(B, 8))
    elif B >= 2:
        bt = min(bt, pl.cdiv(B, 2))
    # Exact divisor of B -> no zero-padding, no extra HBM copy in the wrapper.
    bt = _largest_divisor_leq(B, bt)
    return bt, int(vmem_limit)


@jax.jit
def ssim(x, y):
    """x, y: (N, C, H, W) float arrays. Returns (N, C, H, W) SSIM loss map."""
    N, C, H, W = x.shape
    assert H >= 2 and W >= 2, "ReflectionPad2d(1) requires H >= 2 and W >= 2"
    B = N * C
    xf = x.reshape(B, H, W)
    yf = y.reshape(B, H, W)

    block_b, vmem_limit = _pick_tiling(B, H, W, x.dtype.itemsize)

    # TODO(synk): H-tile with a 1-row halo (pl.ANY + manual make_async_copy)
    #   for planes too large to keep resident on a 64 MiB-VMEM v7x TensorCore.
    # TODO(synk): when W is large and not 128-aligned, carry a lane-padded
    #   last dim through the kernel path (padding in the wrapper would cost a
    #   full extra HBM copy of the inputs, so it is deliberately avoided).
    out = pl.pallas_call(
        ssim_kernel,
        out_shape=jax.ShapeDtypeStruct((B, H, W), x.dtype),
        grid_spec=pltpu.PrefetchScalarGridSpec(
            num_scalar_prefetch=0,
            grid=(B // block_b,),
            in_specs=[
                pl.BlockSpec((block_b, H, W), lambda b: (b, 0, 0)),
                pl.BlockSpec((block_b, H, W), lambda b: (b, 0, 0)),
            ],
            out_specs=pl.BlockSpec((block_b, H, W), lambda b: (b, 0, 0)),
        ),
        compiler_params=pltpu.CompilerParams(
            dimension_semantics=("parallel",),
            vmem_limit_bytes=vmem_limit,
        ),
    )(xf, yf)

    return out.reshape(N, C, H, W)


def _ssim_reference(x, y):
    # Pure-JAX reference (mirrors the PyTorch module exactly).
    xp = jnp.pad(x, ((0, 0), (0, 0), (1, 1), (1, 1)), mode="reflect")
    yp = jnp.pad(y, ((0, 0), (0, 0), (1, 1), (1, 1)), mode="reflect")

    def pool(a):
        Np, Cp, Hp, Wp = a.shape
        H, W = Hp - 2, Wp - 2
        s = jnp.zeros((Np, Cp, H, W), a.dtype)
        for di in range(3):
            for dj in range(3):
                s = s + a[:, :, di:di + H, dj:dj + W]
        return s / 9.0

    mu_x = pool(xp)
    mu_y = pool(yp)
    sigma_x = pool(xp * xp) - mu_x ** 2
    sigma_y = pool(yp * yp) - mu_y ** 2
    sigma_xy = pool(xp * yp) - mu_x * mu_y
    n = (2 * mu_x * mu_y + C1) * (2 * sigma_xy + C2)
    d = (mu_x ** 2 + mu_y ** 2 + C1) * (sigma_x + sigma_y + C2)
    return jnp.clip((1 - n / d) / 2, 0.0, 1.0)


if __name__ == "__main__":
    key = jax.random.PRNGKey(0)
    kx, ky = jax.random.split(key)
    # Small test shapes; W chosen lane-dense (multiple of 128) per the review.
    N, C, H, W = 2, 4, 16, 128
    x = jax.random.uniform(kx, (N, C, H, W), dtype=jnp.float32)
    y = jax.random.uniform(ky, (N, C, H, W), dtype=jnp.float32)

    out = jax.block_until_ready(ssim(x, y))
    ref = jax.block_until_ready(_ssim_reference(x, y))

    assert out.shape == (N, C, H, W)
    assert jnp.allclose(out, ref, atol=1e-5, rtol=1e-5), "mismatch vs reference"
    print("KERNEL_OK")
</pallas_src>

<mosaic_0001>
module attributes {stable_mosaic.version = 11 : i64} {
  func.func @ssim_kernel(%arg0: i32, %arg1: memref<1x16x128xf32, #tpu.memory_space<vmem>>, %arg2: memref<1x16x128xf32, #tpu.memory_space<vmem>>, %arg3: memref<1x16x128xf32, #tpu.memory_space<vmem>>) attributes {dimension_semantics = [#tpu.dimension_semantics<parallel>], iteration_bounds = array<i64: 8>, scalar_prefetch = 0 : i64, scratch_operands = 0 : i64, tpu.core_type = #tpu.core_type<tc>, window_params = [{transform_indices = @transform_0, window_bounds = array<i64: 1, 16, 128>}, {transform_indices = @transform_1, window_bounds = array<i64: 1, 16, 128>}, {transform_indices = @transform_2, window_bounds = array<i64: 1, 16, 128>}]} {
    %c0 = arith.constant 0 : index
    %c0_0 = arith.constant 0 : index
    %c0_1 = arith.constant 0 : index
    %0 = vector.load %arg1[%c0, %c0_0, %c0_1] : memref<1x16x128xf32, #tpu.memory_space<vmem>>, vector<1x16x128xf32>
    %c0_2 = arith.constant 0 : index
    %c0_3 = arith.constant 0 : index
    %c0_4 = arith.constant 0 : index
    %1 = vector.load %arg2[%c0_2, %c0_3, %c0_4] : memref<1x16x128xf32, #tpu.memory_space<vmem>>, vector<1x16x128xf32>
    %2 = tpu.iota {dimensions = array<i32: 1>} : vector<1x16x128xi32>
    %3 = tpu.iota {dimensions = array<i32: 2>} : vector<1x16x128xi32>
    %c0_i32 = arith.constant 0 : i32
    %4 = vector.broadcast %c0_i32 : i32 to vector<1x16x128xi32>
    %5 = arith.cmpi eq, %2, %4 : vector<1x16x128xi32>
    %c15_i32 = arith.constant 15 : i32
    %6 = vector.broadcast %c15_i32 : i32 to vector<1x16x128xi32>
    %7 = arith.cmpi eq, %2, %6 : vector<1x16x128xi32>
    %c0_i32_5 = arith.constant 0 : i32
    %8 = vector.broadcast %c0_i32_5 : i32 to vector<1x16x128xi32>
    %9 = arith.cmpi eq, %3, %8 : vector<1x16x128xi32>
    %c127_i32 = arith.constant 127 : i32
    %10 = vector.broadcast %c127_i32 : i32 to vector<1x16x128xi32>
    %11 = arith.cmpi eq, %3, %10 : vector<1x16x128xi32>
    %c1_i32 = arith.constant 1 : i32
    %12 = tpu.dynamic_rotate %0 by %c1_i32 dim 1 : vector<1x16x128xf32>, i32 -> vector<1x16x128xf32>
    %c15_i32_6 = arith.constant 15 : i32
    %13 = tpu.dynamic_rotate %0 by %c15_i32_6 dim 1 : vector<1x16x128xf32>, i32 -> vector<1x16x128xf32>
    %14 = arith.addf %12, %0 : vector<1x16x128xf32>
    %15 = arith.addf %14, %13 : vector<1x16x128xf32>
    %16 = vector.extract_strided_slice %0 {offsets = [0, 0, 0], sizes = [1, 1, 128], strides = [1, 1, 1]} : vector<1x16x128xf32> to vector<1x1x128xf32>
    %17 = vector.extract_strided_slice %0 {offsets = [0, 1, 0], sizes = [1, 1, 128], strides = [1, 1, 1]} : vector<1x16x128xf32> to vector<1x1x128xf32>
    %cst = arith.constant 2.000000e+00 : f32
    %18 = vector.broadcast %cst : f32 to vector<1x1x128xf32>
    %19 = arith.mulf %18, %17 : vector<1x1x128xf32>
    %20 = arith.addf %16, %19 : vector<1x1x128xf32>
    %21 = vector.shape_cast %20 : vector<1x1x128xf32> to vector<1x1x128xf32>
    %22 = vector.broadcast %21 : vector<1x1x128xf32> to vector<1x16x128xf32>
    %23 = arith.select %5, %22, %15 : vector<1x16x128xi1>, vector<1x16x128xf32>
    %24 = vector.extract_strided_slice %0 {offsets = [0, 15, 0], sizes = [1, 1, 128], strides = [1, 1, 1]} : vector<1x16x128xf32> to vector<1x1x128xf32>
    %25 = vector.extract_strided_slice %0 {offsets = [0, 14, 0], sizes = [1, 1, 128], strides = [1, 1, 1]} : vector<1x16x128xf32> to vector<1x1x128xf32>
    %cst_7 = arith.constant 2.000000e+00 : f32
    %26 = vector.broadcast %cst_7 : f32 to vector<1x1x128xf32>
    %27 = arith.mulf %26, %25 : vector<1x1x128xf32>
    %28 = arith.addf %24, %27 : vector<1x1x128xf32>
    %29 = vector.shape_cast %28 : vector<1x1x128xf32> to vector<1x1x128xf32>
    %30 = vector.broadcast %29 : vector<1x1x128xf32> to vector<1x16x128xf32>
    %31 = arith.select %7, %30, %23 : vector<1x16x128xi1>, vector<1x16x128xf32>
    %c1_i32_8 = arith.constant 1 : i32
    %32 = tpu.dynamic_rotate %31 by %c1_i32_8 dim 2 : vector<1x16x128xf32>, i32 -> vector<1x16x128xf32>
    %c127_i32_9 = arith.constant 127 : i32
    %33 = tpu.dynamic_rotate %31 by %c127_i32_9 dim 2 : vector<1x16x128xf32>, i32 -> vector<1x16x128xf32>
    %34 = arith.addf %32, %31 : vector<1x16x128xf32>
    %35 = arith.addf %34, %33 : vector<1x16x128xf32>
    %36 = vector.extract_strided_slice %31 {offsets = [0, 0, 0], sizes = [1, 16, 1], strides = [1, 1, 1]} : vector<1x16x128xf32> to vector<1x16x1xf32>
    %37 = vector.extract_strided_slice %31 {offsets = [0, 0, 1], sizes = [1, 16, 1], strides = [1, 1, 1]} : vector<1x16x128xf32> to vector<1x16x1xf32>
    %cst_10 = arith.constant 2.000000e+00 : f32
    %38 = vector.broadcast %cst_10 : f32 to vector<1x16x1xf32>
    %39 = arith.mulf %38, %37 : vector<1x16x1xf32>
    %40 = arith.addf %36, %39 : vector<1x16x1xf32>
    %41 = vector.shape_cast %40 : vector<1x16x1xf32> to vector<1x16x1xf32>
    %42 = vector.broadcast %41 : vector<1x16x1xf32> to vector<1x16x128xf32>
    %43 = arith.select %9, %42, %35 : vector<1x16x128xi1>, vector<1x16x128xf32>
    %44 = vector.extract_strided_slice %31 {offsets = [0, 0, 127], sizes = [1, 16, 1], strides = [1, 1, 1]} : vector<1x16x128xf32> to vector<1x16x1xf32>
    %45 = vector.extract_strided_slice %31 {offsets = [0, 0, 126], sizes = [1, 16, 1], strides = [1, 1, 1]} : vector<1x16x128xf32> to vector<1x16x1xf32>
    %cst_11 = arith.constant 2.000000e+00 : f32
    %46 = vector.broadcast %cst_11 : f32 to vector<1x16x1xf32>
    %47 = arith.mulf %46, %45 : vector<1x16x1xf32>
    %48 = arith.addf %44, %47 : vector<1x16x1xf32>
    %49 = vector.shape_cast %48 : vector<1x16x1xf32> to vector<1x16x1xf32>
    %50 = vector.broadcast %49 : vector<1x16x1xf32> to vector<1x16x128xf32>
    %51 = arith.select %11, %50, %43 : vector<1x16x128xi1>, vector<1x16x128xf32>
    %cst_12 = arith.constant 0.111111112 : f32
    %52 = vector.broadcast %cst_12 : f32 to vector<1x16x128xf32>
    %53 = arith.mulf %51, %52 : vector<1x16x128xf32>
    %c1_i32_13 = arith.constant 1 : i32
    %54 = tpu.dynamic_rotate %1 by %c1_i32_13 dim 1 : vector<1x16x128xf32>, i32 -> vector<1x16x128xf32>
    %c15_i32_14 = arith.constant 15 : i32
    %55 = tpu.dynamic_rotate %1 by %c15_i32_14 dim 1 : vector<1x16x128xf32>, i32 -> vector<1x16x128xf32>
    %56 = arith.addf %54, %1 : vector<1x16x128xf32>
    %57 = arith.addf %56, %55 : vector<1x16x128xf32>
    %58 = vector.extract_strided_slice %1 {offsets = [0, 0, 0], sizes = [1, 1, 128], strides = [1, 1, 1]} : vector<1x16x128xf32> to vector<1x1x128xf32>
    %59 = vector.extract_strided_slice %1 {offsets = [0, 1, 0], sizes = [1, 1, 128], strides = [1, 1, 1]} : vector<1x16x128xf32> to vector<1x1x128xf32>
    %cst_15 = arith.constant 2.000000e+00 : f32
    %60 = vector.broadcast %cst_15 : f32 to vector<1x1x128xf32>
    %61 = arith.mulf %60, %59 : vector<1x1x128xf32>
    %62 = arith.addf %58, %61 : vector<1x1x128xf32>
    %63 = vector.shape_cast %62 : vector<1x1x128xf32> to vector<1x1x128xf32>
    %64 = vector.broadcast %63 : vector<1x1x128xf32> to vector<1x16x128xf32>
    %65 = arith.select %5, %64, %57 : vector<1x16x128xi1>, vector<1x16x128xf32>
    %66 = vector.extract_strided_slice %1 {offsets = [0, 15, 0], sizes = [1, 1, 128], strides = [1, 1, 1]} : vector<1x16x128xf32> to vector<1x1x128xf32>
    %67 = vector.extract_strided_slice %1 {offsets = [0, 14, 0], sizes = [1, 1, 128], strides = [1, 1, 1]} : vector<1x16x128xf32> to vector<1x1x128xf32>
    %cst_16 = arith.constant 2.000000e+00 : f32
    %68 = vector.broadcast %cst_16 : f32 to vector<1x1x128xf32>
    %69 = arith.mulf %68, %67 : vector<1x1x128xf32>
    %70 = arith.addf %66, %69 : vector<1x1x128xf32>
    %71 = vector.shape_cast %70 : vector<1x1x128xf32> to vector<1x1x128xf32>
    %72 = vector.broadcast %71 : vector<1x1x128xf32> to vector<1x16x128xf32>
    %73 = arith.select %7, %72, %65 : vector<1x16x128xi1>, vector<1x16x128xf32>
    %c1_i32_17 = arith.constant 1 : i32
    %74 = tpu.dynamic_rotate %73 by %c1_i32_17 dim 2 : vector<1x16x128xf32>, i32 -> vector<1x16x128xf32>
    %c127_i32_18 = arith.constant 127 : i32
    %75 = tpu.dynamic_rotate %73 by %c127_i32_18 dim 2 : vector<1x16x128xf32>, i32 -> vector<1x16x128xf32>
    %76 = arith.addf %74, %73 : vector<1x16x128xf32>
    %77 = arith.addf %76, %75 : vector<1x16x128xf32>
    %78 = vector.extract_strided_slice %73 {offsets = [0, 0, 0], sizes = [1, 16, 1], strides = [1, 1, 1]} : vector<1x16x128xf32> to vector<1x16x1xf32>
    %79 = vector.extract_strided_slice %73 {offsets = [0, 0, 1], sizes = [1, 16, 1], strides = [1, 1, 1]} : vector<1x16x128xf32> to vector<1x16x1xf32>
    %cst_19 = arith.constant 2.000000e+00 : f32
    %80 = vector.broadcast %cst_19 : f32 to vector<1x16x1xf32>
    %81 = arith.mulf %80, %79 : vector<1x16x1xf32>
    %82 = arith.addf %78, %81 : vector<1x16x1xf32>
    %83 = vector.shape_cast %82 : vector<1x16x1xf32> to vector<1x16x1xf32>
    %84 = vector.broadcast %83 : vector<1x16x1xf32> to vector<1x16x128xf32>
    %85 = arith.select %9, %84, %77 : vector<1x16x128xi1>, vector<1x16x128xf32>
    %86 = vector.extract_strided_slice %73 {offsets = [0, 0, 127], sizes = [1, 16, 1], strides = [1, 1, 1]} : vector<1x16x128xf32> to vector<1x16x1xf32>
    %87 = vector.extract_strided_slice %73 {offsets = [0, 0, 126], sizes = [1, 16, 1], strides = [1, 1, 1]} : vector<1x16x128xf32> to vector<1x16x1xf32>
    %cst_20 = arith.constant 2.000000e+00 : f32
    %88 = vector.broadcast %cst_20 : f32 to vector<1x16x1xf32>
    %89 = arith.mulf %88, %87 : vector<1x16x1xf32>
    %90 = arith.addf %86, %89 : vector<1x16x1xf32>
    %91 = vector.shape_cast %90 : vector<1x16x1xf32> to vector<1x16x1xf32>
    %92 = vector.broadcast %91 : vector<1x16x1xf32> to vector<1x16x128xf32>
    %93 = arith.select %11, %92, %85 : vector<1x16x128xi1>, vector<1x16x128xf32>
    %cst_21 = arith.constant 0.111111112 : f32
    %94 = vector.broadcast %cst_21 : f32 to vector<1x16x128xf32>
    %95 = arith.mulf %93, %94 : vector<1x16x128xf32>
    %96 = arith.mulf %53, %53 : vector<1x16x128xf32>
    %97 = arith.mulf %95, %95 : vector<1x16x128xf32>
    %98 = arith.mulf %53, %95 : vector<1x16x128xf32>
    %99 = arith.mulf %0, %0 : vector<1x16x128xf32>
    %c1_i32_22 = arith.constant 1 : i32
    %100 = tpu.dynamic_rotate %99 by %c1_i32_22 dim 1 : vector<1x16x128xf32>, i32 -> vector<1x16x128xf32>
    %c15_i32_23 = arith.constant 15 : i32
    %101 = tpu.dynamic_rotate %99 by %c15_i32_23 dim 1 : vector<1x16x128xf32>, i32 -> vector<1x16x128xf32>
    %102 = arith.addf %100, %99 : vector<1x16x128xf32>
    %103 = arith.addf %102, %101 : vector<1x16x128xf32>
    %104 = vector.extract_strided_slice %99 {offsets = [0, 0, 0], sizes = [1, 1, 128], strides = [1, 1, 1]} : vector<1x16x128xf32> to vector<1x1x128xf32>
    %105 = vector.extract_strided_slice %99 {offsets = [0, 1, 0], sizes = [1, 1, 128], strides = [1, 1, 1]} : vector<1x16x128xf32> to vector<1x1x128xf32>
    %cst_24 = arith.constant 2.000000e+00 : f32
    %106 = vector.broadcast %cst_24 : f32 to vector<1x1x128xf32>
    %107 = arith.mulf %106, %105 : vector<1x1x128xf32>
    %108 = arith.addf %104, %107 : vector<1x1x128xf32>
    %109 = vector.shape_cast %108 : vector<1x1x128xf32> to vector<1x1x128xf32>
    %110 = vector.broadcast %109 : vector<1x1x128xf32> to vector<1x16x128xf32>
    %111 = arith.select %5, %110, %103 : vector<1x16x128xi1>, vector<1x16x128xf32>
    %112 = vector.extract_strided_slice %99 {offsets = [0, 15, 0], sizes = [1, 1, 128], strides = [1, 1, 1]} : vector<1x16x128xf32> to vector<1x1x128xf32>
    %113 = vector.extract_strided_slice %99 {offsets = [0, 14, 0], sizes = [1, 1, 128], strides = [1, 1, 1]} : vector<1x16x128xf32> to vector<1x1x128xf32>
    %cst_25 = arith.constant 2.000000e+00 : f32
    %114 = vector.broadcast %cst_25 : f32 to vector<1x1x128xf32>
    %115 = arith.mulf %114, %113 : vector<1x1x128xf32>
    %116 = arith.addf %112, %115 : vector<1x1x128xf32>
    %117 = vector.shape_cast %116 : vector<1x1x128xf32> to vector<1x1x128xf32>
    %118 = vector.broadcast %117 : vector<1x1x128xf32> to vector<1x16x128xf32>
    %119 = arith.select %7, %118, %111 : vector<1x16x128xi1>, vector<1x16x128xf32>
    %c1_i32_26 = arith.constant 1 : i32
    %120 = tpu.dynamic_rotate %119 by %c1_i32_26 dim 2 : vector<1x16x128xf32>, i32 -> vector<1x16x128xf32>
    %c127_i32_27 = arith.constant 127 : i32
    %121 = tpu.dynamic_rotate %119 by %c127_i32_27 dim 2 : vector<1x16x128xf32>, i32 -> vector<1x16x128xf32>
    %122 = arith.addf %120, %119 : vector<1x16x128xf32>
    %123 = arith.addf %122, %121 : vector<1x16x128xf32>
    %124 = vector.extract_strided_slice %119 {offsets = [0, 0, 0], sizes = [1, 16, 1], strides = [1, 1, 1]} : vector<1x16x128xf32> to vector<1x16x1xf32>
    %125 = vector.extract_strided_slice %119 {offsets = [0, 0, 1], sizes = [1, 16, 1], strides = [1, 1, 1]} : vector<1x16x128xf32> to vector<1x16x1xf32>
    %cst_28 = arith.constant 2.000000e+00 : f32
    %126 = vector.broadcast %cst_28 : f32 to vector<1x16x1xf32>
    %127 = arith.mulf %126, %125 : vector<1x16x1xf32>
    %128 = arith.addf %124, %127 : vector<1x16x1xf32>
    %129 = vector.shape_cast %128 : vector<1x16x1xf32> to vector<1x16x1xf32>
    %130 = vector.broadcast %129 : vector<1x16x1xf32> to vector<1x16x128xf32>
    %131 = arith.select %9, %130, %123 : vector<1x16x128xi1>, vector<1x16x128xf32>
    %132 = vector.extract_strided_slice %119 {offsets = [0, 0, 127], sizes = [1, 16, 1], strides = [1, 1, 1]} : vector<1x16x128xf32> to vector<1x16x1xf32>
    %133 = vector.extract_strided_slice %119 {offsets = [0, 0, 126], sizes = [1, 16, 1], strides = [1, 1, 1]} : vector<1x16x128xf32> to vector<1x16x1xf32>
    %cst_29 = arith.constant 2.000000e+00 : f32
    %134 = vector.broadcast %cst_29 : f32 to vector<1x16x1xf32>
    %135 = arith.mulf %134, %133 : vector<1x16x1xf32>
    %136 = arith.addf %132, %135 : vector<1x16x1xf32>
    %137 = vector.shape_cast %136 : vector<1x16x1xf32> to vector<1x16x1xf32>
    %138 = vector.broadcast %137 : vector<1x16x1xf32> to vector<1x16x128xf32>
    %139 = arith.select %11, %138, %131 : vector<1x16x128xi1>, vector<1x16x128xf32>
    %cst_30 = arith.constant 0.111111112 : f32
    %140 = vector.broadcast %cst_30 : f32 to vector<1x16x128xf32>
    %141 = arith.mulf %139, %140 : vector<1x16x128xf32>
    %142 = arith.subf %141, %96 : vector<1x16x128xf32>
    %143 = arith.mulf %1, %1 : vector<1x16x128xf32>
    %c1_i32_31 = arith.constant 1 : i32
    %144 = tpu.dynamic_rotate %143 by %c1_i32_31 dim 1 : vector<1x16x128xf32>, i32 -> vector<1x16x128xf32>
    %c15_i32_32 = arith.constant 15 : i32
    %145 = tpu.dynamic_rotate %143 by %c15_i32_32 dim 1 : vector<1x16x128xf32>, i32 -> vector<1x16x128xf32>
    %146 = arith.addf %144, %143 : vector<1x16x128xf32>
    %147 = arith.addf %146, %145 : vector<1x16x128xf32>
    %148 = vector.extract_strided_slice %143 {offsets = [0, 0, 0], sizes = [1, 1, 128], strides = [1, 1, 1]} : vector<1x16x128xf32> to vector<1x1x128xf32>
    %149 = vector.extract_strided_slice %143 {offsets = [0, 1, 0], sizes = [1, 1, 128], strides = [1, 1, 1]} : vector<1x16x128xf32> to vector<1x1x128xf32>
    %cst_33 = arith.constant 2.000000e+00 : f32
    %150 = vector.broadcast %cst_33 : f32 to vector<1x1x128xf32>
    %151 = arith.mulf %150, %149 : vector<1x1x128xf32>
    %152 = arith.addf %148, %151 : vector<1x1x128xf32>
    %153 = vector.shape_cast %152 : vector<1x1x128xf32> to vector<1x1x128xf32>
    %154 = vector.broadcast %153 : vector<1x1x128xf32> to vector<1x16x128xf32>
    %155 = arith.select %5, %154, %147 : vector<1x16x128xi1>, vector<1x16x128xf32>
    %156 = vector.extract_strided_slice %143 {offsets = [0, 15, 0], sizes = [1, 1, 128], strides = [1, 1, 1]} : vector<1x16x128xf32> to vector<1x1x128xf32>
    %157 = vector.extract_strided_slice %143 {offsets = [0, 14, 0], sizes = [1, 1, 128], strides = [1, 1, 1]} : vector<1x16x128xf32> to vector<1x1x128xf32>
    %cst_34 = arith.constant 2.000000e+00 : f32
    %158 = vector.broadcast %cst_34 : f32 to vector<1x1x128xf32>
    %159 = arith.mulf %158, %157 : vector<1x1x128xf32>
    %160 = arith.addf %156, %159 : vector<1x1x128xf32>
    %161 = vector.shape_cast %160 : vector<1x1x128xf32> to vector<1x1x128xf32>
    %162 = vector.broadcast %161 : vector<1x1x128xf32> to vector<1x16x128xf32>
    %163 = arith.select %7, %162, %155 : vector<1x16x128xi1>, vector<1x16x128xf32>
    %c1_i32_35 = arith.constant 1 : i32
    %164 = tpu.dynamic_rotate %163 by %c1_i32_35 dim 2 : vector<1x16x128xf32>, i32 -> vector<1x16x128xf32>
    %c127_i32_36 = arith.constant 127 : i32
    %165 = tpu.dynamic_rotate %163 by %c127_i32_36 dim 2 : vector<1x16x128xf32>, i32 -> vector<1x16x128xf32>
    %166 = arith.addf %164, %163 : vector<1x16x128xf32>
    %167 = arith.addf %166, %165 : vector<1x16x128xf32>
    %168 = vector.extract_strided_slice %163 {offsets = [0, 0, 0], sizes = [1, 16, 1], strides = [1, 1, 1]} : vector<1x16x128xf32> to vector<1x16x1xf32>
    %169 = vector.extract_strided_slice %163 {offsets = [0, 0, 1], sizes = [1, 16, 1], strides = [1, 1, 1]} : vector<1x16x128xf32> to vector<1x16x1xf32>
    %cst_37 = arith.constant 2.000000e+00 : f32
    %170 = vector.broadcast %cst_37 : f32 to vector<1x16x1xf32>
    %171 = arith.mulf %170, %169 : vector<1x16x1xf32>
    %172 = arith.addf %168, %171 : vector<1x16x1xf32>
    %173 = vector.shape_cast %172 : vector<1x16x1xf32> to vector<1x16x1xf32>
    %174 = vector.broadcast %173 : vector<1x16x1xf32> to vector<1x16x128xf32>
    %175 = arith.select %9, %174, %167 : vector<1x16x128xi1>, vector<1x16x128xf32>
    %176 = vector.extract_strided_slice %163 {offsets = [0, 0, 127], sizes = [1, 16, 1], strides = [1, 1, 1]} : vector<1x16x128xf32> to vector<1x16x1xf32>
    %177 = vector.extract_strided_slice %163 {offsets = [0, 0, 126], sizes = [1, 16, 1], strides = [1, 1, 1]} : vector<1x16x128xf32> to vector<1x16x1xf32>
    %cst_38 = arith.constant 2.000000e+00 : f32
    %178 = vector.broadcast %cst_38 : f32 to vector<1x16x1xf32>
    %179 = arith.mulf %178, %177 : vector<1x16x1xf32>
    %180 = arith.addf %176, %179 : vector<1x16x1xf32>
    %181 = vector.shape_cast %180 : vector<1x16x1xf32> to vector<1x16x1xf32>
    %182 = vector.broadcast %181 : vector<1x16x1xf32> to vector<1x16x128xf32>
    %183 = arith.select %11, %182, %175 : vector<1x16x128xi1>, vector<1x16x128xf32>
    %cst_39 = arith.constant 0.111111112 : f32
    %184 = vector.broadcast %cst_39 : f32 to vector<1x16x128xf32>
    %185 = arith.mulf %183, %184 : vector<1x16x128xf32>
    %186 = arith.subf %185, %97 : vector<1x16x128xf32>
    %187 = arith.mulf %0, %1 : vector<1x16x128xf32>
    %c1_i32_40 = arith.constant 1 : i32
    %188 = tpu.dynamic_rotate %187 by %c1_i32_40 dim 1 : vector<1x16x128xf32>, i32 -> vector<1x16x128xf32>
    %c15_i32_41 = arith.constant 15 : i32
    %189 = tpu.dynamic_rotate %187 by %c15_i32_41 dim 1 : vector<1x16x128xf32>, i32 -> vector<1x16x128xf32>
    %190 = arith.addf %188, %187 : vector<1x16x128xf32>
    %191 = arith.addf %190, %189 : vector<1x16x128xf32>
    %192 = vector.extract_strided_slice %187 {offsets = [0, 0, 0], sizes = [1, 1, 128], strides = [1, 1, 1]} : vector<1x16x128xf32> to vector<1x1x128xf32>
    %193 = vector.extract_strided_slice %187 {offsets = [0, 1, 0], sizes = [1, 1, 128], strides = [1, 1, 1]} : vector<1x16x128xf32> to vector<1x1x128xf32>
    %cst_42 = arith.constant 2.000000e+00 : f32
    %194 = vector.broadcast %cst_42 : f32 to vector<1x1x128xf32>
    %195 = arith.mulf %194, %193 : vector<1x1x128xf32>
    %196 = arith.addf %192, %195 : vector<1x1x128xf32>
    %197 = vector.shape_cast %196 : vector<1x1x128xf32> to vector<1x1x128xf32>
    %198 = vector.broadcast %197 : vector<1x1x128xf32> to vector<1x16x128xf32>
    %199 = arith.select %5, %198, %191 : vector<1x16x128xi1>, vector<1x16x128xf32>
    %200 = vector.extract_strided_slice %187 {offsets = [0, 15, 0], sizes = [1, 1, 128], strides = [1, 1, 1]} : vector<1x16x128xf32> to vector<1x1x128xf32>
    %201 = vector.extract_strided_slice %187 {offsets = [0, 14, 0], sizes = [1, 1, 128], strides = [1, 1, 1]} : vector<1x16x128xf32> to vector<1x1x128xf32>
    %cst_43 = arith.constant 2.000000e+00 : f32
    %202 = vector.broadcast %cst_43 : f32 to vector<1x1x128xf32>
    %203 = arith.mulf %202, %201 : vector<1x1x128xf32>
    %204 = arith.addf %200, %203 : vector<1x1x128xf32>
    %205 = vector.shape_cast %204 : vector<1x1x128xf32> to vector<1x1x128xf32>
    %206 = vector.broadcast %205 : vector<1x1x128xf32> to vector<1x16x128xf32>
    %207 = arith.select %7, %206, %199 : vector<1x16x128xi1>, vector<1x16x128xf32>
    %c1_i32_44 = arith.constant 1 : i32
    %208 = tpu.dynamic_rotate %207 by %c1_i32_44 dim 2 : vector<1x16x128xf32>, i32 -> vector<1x16x128xf32>
    %c127_i32_45 = arith.constant 127 : i32
    %209 = tpu.dynamic_rotate %207 by %c127_i32_45 dim 2 : vector<1x16x128xf32>, i32 -> vector<1x16x128xf32>
    %210 = arith.addf %208, %207 : vector<1x16x128xf32>
    %211 = arith.addf %210, %209 : vector<1x16x128xf32>
    %212 = vector.extract_strided_slice %207 {offsets = [0, 0, 0], sizes = [1, 16, 1], strides = [1, 1, 1]} : vector<1x16x128xf32> to vector<1x16x1xf32>
    %213 = vector.extract_strided_slice %207 {offsets = [0, 0, 1], sizes = [1, 16, 1], strides = [1, 1, 1]} : vector<1x16x128xf32> to vector<1x16x1xf32>
    %cst_46 = arith.constant 2.000000e+00 : f32
    %214 = vector.broadcast %cst_46 : f32 to vector<1x16x1xf32>
    %215 = arith.mulf %214, %213 : vector<1x16x1xf32>
    %216 = arith.addf %212, %215 : vector<1x16x1xf32>
    %217 = vector.shape_cast %216 : vector<1x16x1xf32> to vector<1x16x1xf32>
    %218 = vector.broadcast %217 : vector<1x16x1xf32> to vector<1x16x128xf32>
    %219 = arith.select %9, %218, %211 : vector<1x16x128xi1>, vector<1x16x128xf32>
    %220 = vector.extract_strided_slice %207 {offsets = [0, 0, 127], sizes = [1, 16, 1], strides = [1, 1, 1]} : vector<1x16x128xf32> to vector<1x16x1xf32>
    %221 = vector.extract_strided_slice %207 {offsets = [0, 0, 126], sizes = [1, 16, 1], strides = [1, 1, 1]} : vector<1x16x128xf32> to vector<1x16x1xf32>
    %cst_47 = arith.constant 2.000000e+00 : f32
    %222 = vector.broadcast %cst_47 : f32 to vector<1x16x1xf32>
    %223 = arith.mulf %222, %221 : vector<1x16x1xf32>
    %224 = arith.addf %220, %223 : vector<1x16x1xf32>
    %225 = vector.shape_cast %224 : vector<1x16x1xf32> to vector<1x16x1xf32>
    %226 = vector.broadcast %225 : vector<1x16x1xf32> to vector<1x16x128xf32>
    %227 = arith.select %11, %226, %219 : vector<1x16x128xi1>, vector<1x16x128xf32>
    %cst_48 = arith.constant 0.111111112 : f32
    %228 = vector.broadcast %cst_48 : f32 to vector<1x16x128xf32>
    %229 = arith.mulf %227, %228 : vector<1x16x128xf32>
    %230 = arith.subf %229, %98 : vector<1x16x128xf32>
    %cst_49 = arith.constant 2.000000e+00 : f32
    %231 = vector.broadcast %cst_49 : f32 to vector<1x16x128xf32>
    %232 = arith.mulf %231, %98 : vector<1x16x128xf32>
    %cst_50 = arith.constant 9.99999974E-5 : f32
    %233 = vector.broadcast %cst_50 : f32 to vector<1x16x128xf32>
    %234 = arith.addf %232, %233 : vector<1x16x128xf32>
    %cst_51 = arith.constant 2.000000e+00 : f32
    %235 = vector.broadcast %cst_51 : f32 to vector<1x16x128xf32>
    %236 = arith.mulf %235, %230 : vector<1x16x128xf32>
    %cst_52 = arith.constant 8.99999984E-4 : f32
    %237 = vector.broadcast %cst_52 : f32 to vector<1x16x128xf32>
    %238 = arith.addf %236, %237 : vector<1x16x128xf32>
    %239 = arith.mulf %234, %238 : vector<1x16x128xf32>
    %240 = arith.addf %96, %97 : vector<1x16x128xf32>
    %cst_53 = arith.constant 9.99999974E-5 : f32
    %241 = vector.broadcast %cst_53 : f32 to vector<1x16x128xf32>
    %242 = arith.addf %240, %241 : vector<1x16x128xf32>
    %243 = arith.addf %142, %186 : vector<1x16x128xf32>
    %cst_54 = arith.constant 8.99999984E-4 : f32
    %244 = vector.broadcast %cst_54 : f32 to vector<1x16x128xf32>
    %245 = arith.addf %243, %244 : vector<1x16x128xf32>
    %246 = arith.mulf %242, %245 : vector<1x16x128xf32>
    %247 = tpu.reciprocal %246 {approx = true} : vector<1x16x128xf32> -> vector<1x16x128xf32>
    %248 = arith.mulf %246, %247 : vector<1x16x128xf32>
    %cst_55 = arith.constant 2.000000e+00 : f32
    %249 = vector.broadcast %cst_55 : f32 to vector<1x16x128xf32>
    %250 = arith.subf %249, %248 : vector<1x16x128xf32>
    %251 = arith.mulf %247, %250 : vector<1x16x128xf32>
    %252 = arith.mulf %239, %251 : vector<1x16x128xf32>
    %cst_56 = arith.constant 1.000000e+00 : f32
    %253 = vector.broadcast %cst_56 : f32 to vector<1x16x128xf32>
    %254 = arith.subf %253, %252 : vector<1x16x128xf32>
    %cst_57 = arith.constant 5.000000e-01 : f32
    %255 = vector.broadcast %cst_57 : f32 to vector<1x16x128xf32>
    %256 = arith.mulf %254, %255 : vector<1x16x128xf32>
    %cst_58 = arith.constant 0.000000e+00 : f32
    %cst_59 = arith.constant 1.000000e+00 : f32
    %257 = vector.broadcast %cst_58 : f32 to vector<1x16x128xf32>
    %258 = arith.maximumf %257, %256 : vector<1x16x128xf32>
    %259 = vector.broadcast %cst_59 : f32 to vector<1x16x128xf32>
    %260 = arith.minimumf %259, %258 : vector<1x16x128xf32>
    %c0_60 = arith.constant 0 : index
    %c0_61 = arith.constant 0 : index
    %c0_62 = arith.constant 0 : index
    %261 = vector.load %arg3[%c0_60, %c0_61, %c0_62] : memref<1x16x128xf32, #tpu.memory_space<vmem>>, vector<1x16x128xf32>
    tpu.vector_store %arg3[%c0_60, %c0_61, %c0_62], %260 {strides = array<i32>} : memref<1x16x128xf32, #tpu.memory_space<vmem>>, vector<1x16x128xf32>,
    return
  }
  func.func @transform_0(%arg0: i32) -> (i32, i32, i32) {
    %c0_i32 = arith.constant 0 : i32
    %c0_i32_0 = arith.constant 0 : i32
    %c0_i32_1 = arith.constant 0 : i32
    return %arg0, %c0_i32, %c0_i32_0 : i32, i32, i32
  }
  func.func @transform_1(%arg0: i32) -> (i32, i32, i32) {
    %c0_i32 = arith.constant 0 : i32
    %c0_i32_0 = arith.constant 0 : i32
    %c0_i32_1 = arith.constant 0 : i32
    return %arg0, %c0_i32, %c0_i32_0 : i32, i32, i32
  }
  func.func @transform_2(%arg0: i32) -> (i32, i32, i32) {
    %c0_i32 = arith.constant 0 : i32
    %c0_i32_0 = arith.constant 0 : i32
    %c0_i32_1 = arith.constant 0 : i32
    return %arg0, %c0_i32, %c0_i32_0 : i32, i32, i32
  }
}

</mosaic_0001>

<bundles_post_ra>
// kernel: ssim.1
= control target key start
LH: loop header
LB: loop body
LE: loop exit
PB: predicated region body
PF: predicated region fallthrough
CT: control target
= control target key end

     0   :  { %7 = vsyncpa [#allocation3], 0  ;;  %s1629_s0 = inlined_call_operand.hbm [shape: f32[8,16,128], index: 0, kind: input, shape index: {}]   ;;  %s1630_s1 = inlined_call_operand.hbm [shape: f32[8,16,128], index: 1, kind: input, shape index: {}]   ;;  %s1631_s2 = inlined_call_operand.hbm [shape: f32[8,16,128], index: 2, kind: output, shape index: {}]  }
   0x1   :  { %9 = vsyncpa [#allocation3 + $0x1], 0 }
   0x2   :  { %10 = vsyncpa [#allocation6], 0 }
   0x3   :  { %12 = vsyncpa [#allocation6 + $0x1], 0 }
   0x4   :  { %13 = vsyncpa [#allocation4], 0 }
   0x5   :  { %15 = vsyncpa [#allocation4 + $0x1], 0  ;;  %s1095_s9 = smov 0   ;;  %s1097_s10 = smov 0  }
   0x6   :  { %s1099_s11 = smov 0   ;;  %s1101_s12 = smov 0  }
   0x7 LB: > { %s1116_s13 = sadd.s32 4294967295, %s1067_s12   ;;  %s847_s14 = sadd.s32 4294967294, %s1067_s12   ;;  %s1067_s12 = sphi %s1101_s12, %s1646_s12   ;;  %s1063_s11 = sphi %s1099_s11, %s1645_s11   ;;  %s1059_s10 = sphi %s1097_s10, %s1644_s10   ;;  %s1055_s9 = sphi %s1095_s9, %s1643_s9  }
   0x8   : > { %s1120_s15 = sadd.s32 1, %s1067_s12   ;;  %s28_s16 = sadd.s32 1, %s1063_s11 }
   0x9   : > { %s25_s17 = ssub.s32 %s1067_s12, %s1120_s15  ;;  %p35_p0 = scmp.ne.s32.totalorder %s1063_s11, %s1059_s10 }
   0xa   : > { %p26_p1 = scmp.eq.s32.totalorder %s25_s17, 0  ;;  %p36_p2 = scmp.eq.s32.totalorder %s1067_s12, 0 }
   0xb   : > { %p41_p3 = scmp.ne.s32.totalorder %s1059_s10, %s1055_s9  ;;  %p42_p4 = scmp.eq.s32.totalorder %s1116_s13, 0 }
   0xc   : > { %s1132_s18 = scalar_select %p26_p1, %s1063_s11, %s28_s16  }
   0xd   : > { %p1134_p5 = por %p36_p2, %p35_p0  ;;  %p1138_p6 = por %p42_p4, %p41_p3 }
   0xe   : > { %p91_p7 = scmp.eq.s32.totalorder %s1116_s13, 7  ;;  %p97_p8 = scmp.eq.s32.totalorder %s847_s14, 7 }
   0xf   : > { %s1635_s20 = scalar_select %p1138_p6, 1, 0 }
  0x10   : > { %p885_p9 = scmp.lt.s32.totalorder %s1067_s12, 8  ;;  %p1144_p10 = por %p91_p7, %p35_p0 }
  0x11   : > { %p1148_p11 = por %p97_p8, %p41_p3  ;;  %s1153_s23 = sand.u32 1, %s1063_s11  }
  0x12   : > { %s1636_s21 = scalar_select %p1144_p10, 1, 0 }
  0x13   : > { %s1637_s22 = scalar_select %p1148_p11, 1, 0 }
  0x14   : > { %s865_s24 = sshll.u32 %s1067_s12, 8  ;;  %s850_s25 = sshll.u32 %s1153_s23, 4 }
  0x15   : > { %s1162_s28 = scalar_lea.hbm %s1629_s0, %s865_s24  ;;  %s121_s29 = scalar_lea.vmem [#allocation2], %s850_s25 }
  0x16   : > { %s128_s30 = sshll.u32 %s121_s29, 4  ;;  %p1168_p12 = pnand %p885_p9, %p1134_p5  ;;  %s1172_s30 = int_to_ptr.vmem [resolvable:$true] %s128_s30 }
  0x17   : > { %s118_s4 = scalar_lea.sflag [#allocation3], %s1153_s23  ;;  %s943_s5 = scalar_lea.hbm %s1162_s28, 256 }
  0x18   : > { %p944_p13 = scmp.ne.s32.totalorder %s1162_s28, %s943_s5  ;;  %p945_p0 = pneg %p1168_p12 }
  0x19   : > { %s948_s8 = scalar_lea.hbm %s1629_s0, 2048  ;;  %p949_p3 = scmp.lt.s32.totalorder %s1162_s28, %s1629_s0 }
  0x1a   : > { %p946_p1 = pnand %p945_p0, %p944_p13  ;;  %p950_p4 = scmp.lt.s32.totalorder %s948_s8, %s943_s5 }
  0x1c   : > { %p947_p2 = pneg %p946_p1  ;;  %p951_p5 = por %p950_p4, %p949_p3 }
  0x1e   : > { %p952_p7 = pnand %p951_p5, %p947_p2 }
  0x20   : > { %955 = shalt.err (!%p952_p7)
}
  0x21   : > { %s956_s17 = scalar_lea.vmem %s1172_s30, 256  ;;  %s1069_s19 = smov [#allocation2]  }
  0x22   : > { %p957_p8 = scmp.ne.s32.totalorder %s1172_s30, %s956_s17  ;;  %s961_s26 = sshll.u32 %s1069_s19, 4  ;;  %s962_s26 = int_to_ptr.vmem [resolvable:$false] %s961_s26 }
  0x23   : > { %s963_s27 = scalar_lea.vmem %s962_s26, 512  ;;  %p964_p1 = scmp.lt.s32.totalorder %s1172_s30, %s962_s26 }
  0x24   : > { %p959_p9 = pnand %p957_p8, %p945_p0  ;;  %p965_p11 = scmp.lt.s32.totalorder %s963_s27, %s956_s17 }
  0x26   : > { %p960_p13 = pneg %p959_p9  ;;  %p966_p10 = por %p965_p11, %p964_p1 }
  0x28   : > { %p967_p3 = pnand %p966_p10, %p960_p13 }
  0x2a   : > { %970 = shalt.err (!%p967_p3)
}
  0x2b   : > { %s1070_s29 = smov 128   ;;  %s1071_s5 = smov 8  }
  0x2c   : > { %877 = dma.hbm_to_vmem [thread:$0]  (!%p1168_p12), %s1162_s28, 256, %s1172_s30, %s118_s4, %s1070_s29, %s1070_s29, %s1071_s5  }
  0x2d   : > { %p856_p10 = scmp.ge.s32.totalorder %s1067_s12, 1  ;;  %p157_p11 = scmp.lt.s32.totalorder %s1067_s12, 9 }
  0x2e   : > { %s1215_s14 = scalar_lea.hbm %s1630_s1, %s865_s24  ;;  %s142_s16 = scalar_lea.vmem [#allocation5], %s850_s25 }
  0x2f   : > { %p1206_p2 = pnand %p856_p10, %p157_p11  ;;  %s149_s17 = sshll.u32 %s142_s16, 4  ;;  %s1219_s17 = int_to_ptr.vmem [resolvable:$true] %s149_s17 }
  0x30   : > { %s139_s28 = scalar_lea.sflag [#allocation6], %s1153_s23  ;;  %s971_s30 = scalar_lea.hbm %s1215_s14, 256 }
  0x31   : > { %p972_p4 = scmp.ne.s32.totalorder %s1215_s14, %s971_s30  ;;  %s976_s24 = scalar_lea.hbm %s1630_s1, 2048 }
  0x32   : > { %p977_p8 = scmp.lt.s32.totalorder %s1215_s14, %s1630_s1  ;;  %p978_p9 = scmp.lt.s32.totalorder %s976_s24, %s971_s30 }
  0x33   : > { %p974_p5 = pnand %p972_p4, %p945_p0 }
  0x34   : > { %p979_p13 = por %p978_p9, %p977_p8 }
  0x35   : > { %p975_p7 = pneg %p974_p5 }
  0x37   : > { %p980_p1 = pnand %p979_p13, %p975_p7 }
  0x39   : > { %983 = shalt.err (!%p980_p1)
}
  0x3a   : > { %s984_s23 = scalar_lea.vmem %s1219_s17, 256  ;;  %s1072_s25 = smov [#allocation5]  }
  0x3b   : > { %p985_p3 = scmp.ne.s32.totalorder %s1219_s17, %s984_s23  ;;  %s989_s7 = sshll.u32 %s1072_s25, 4  ;;  %s990_s7 = int_to_ptr.vmem [resolvable:$false] %s989_s7 }
  0x3c   : > { %s991_s8 = scalar_lea.vmem %s990_s7, 512  ;;  %p992_p4 = scmp.lt.s32.totalorder %s1219_s17, %s990_s7 }
  0x3d   : > { %p987_p10 = pnand %p985_p3, %p945_p0  ;;  %p993_p5 = scmp.lt.s32.totalorder %s991_s8, %s984_s23 }
  0x3f   : > { %p988_p11 = pneg %p987_p10  ;;  %p994_p6 = por %p993_p5, %p992_p4 }
  0x41   : > { %p995_p8 = pnand %p994_p6, %p988_p11 }
  0x43   : > { %998 = shalt.err (!%p995_p8)
}
  0x44   : > { %880 = dma.hbm_to_vmem [thread:$0]  (!%p1168_p12), %s1215_s14, 256, %s1219_s17, %s139_s28, %s1070_s29, %s1070_s29, %s1071_s5  }
  0x45   : > { %161 = sbr.rel (%p1206_p2) target bundleno = 434 (0x1b2), region = 28  ;;  %s1250_s16 = sand.u32 (!%p1206_p2), 1, %s1059_s10  }
  0x46   : > { %s1253_s30 = sshll.u32 (!%p1206_p2), %s1250_s16, 4  ;;  %s164_s4 = scalar_lea.sflag (!%p1206_p2), [#allocation3], %s1250_s16 }
  0x47   : > { %s167_s3 = scalar_lea.vmem (!%p1206_p2), [#allocation2], %s1253_s30  ;;  %p1640_p6 = scmp.ne.s32.totalorder (!%p1206_p2), %s1635_s20, 0 }
  0x4a   : > { %1042 = dma.done.wait (%p1640_p6), %s164_s4, 256  }
  0x4b   : > { %1044 = vsyncadd (%p1640_p6), %s164_s4, 4294967040  ;;  %s173_s29 = scalar_lea.sflag [#allocation6], %s1250_s16  ;;  %s176_s5 = scalar_lea.vmem [#allocation5], %s1253_s30 }
  0x4c   : > { %1046 = dma.done.wait (%p1640_p6), %s173_s29, 256  }
  0x4d   : > { %1048 = vsyncadd (%p1640_p6), %s173_s29, 4294967040  ;;  %v206_v0 = vlaneseq  ;;  %v1275_v3 = vld [vmem:[%s176_s5] sm:$0xff]  ;;  %v1277_v4 = vld [vmem:[%s176_s5 + $0x8] sm:$0xff]  ;;  %s1073_s20 = smov 127   ;;  %s1074_s6 = smov 1  }
  0x4e   : > { %v1283_v6 = vld [vmem:[%s167_s3] sm:$0xff]  ;;  %v311_v8 = vrot.slane %v1275_v3, 7  ;;  %v312_v9 = vrot.slane %v1277_v4, 7  ;;  %v315_v10 = vrot.slane %v1275_v3, 1  ;;  %v316_v11 = vrot.slane %v1277_v4, 1  ;;  %v1292_v12 = vld [vmem:[%s167_s3 + $0x8] sm:$0xff] }
  0x4f   : > { %v1268_v1 = vshrl.u32 %v206_v0, 7  ;;  %v323_v13 = vmul.f32 2.0, %v1275_v3  ;;  %v217_v14 = vrot.slane %v1283_v6, 7  ;;  %v218_v15 = vrot.slane %v1292_v12, 7  ;;  %s867_s14 = sshll.u32 %s1116_s13, 8  ;;  %s201_s17 = scalar_lea.vmem [#allocation7], %s1253_s30 }
  0x50   : > { %v222_v16 = vrot.slane %v1283_v6, 1  ;;  %v223_v19 = vrot.slane %v1292_v12, 1  ;;  %v231_v20 = vmul.f32 2.0, %v1283_v6  ;;  %v334_v32 = vmul.f32 2.0, %v1277_v4  ;;  %s751_s28 = sshll.u32 %s201_s17, 4  ;;  %s1585_s26 = scalar_lea.hbm %s1631_s2, %s867_s14  ;;  %s1587_s28 = int_to_ptr.vmem [resolvable:$true] %s751_s28 }
  0x51   : > { %vm211_vm0 = vcmp.eq.s32.totalorder %v1268_v1, 0  ;;  %vm219_vm1 = vcmp.lt.s32.totalorder %v1268_v1, 1  ;;  %v1273_v2 = vadd.s32 8, %v1268_v1  ;;  %vm224_vm2 = vcmp.lt.s32.totalorder %v1268_v1, 7  ;;  %s738_s27 = scalar_lea.sflag [#allocation4], %s1250_s16  ;;  %s999_s23 = scalar_lea.vmem %s1587_s28, 256 }
  0x52   : > { %v1281_v5 = vsub.s32 0, %v1268_v1  ;;  %v1286_v7 = vsub.s32 7, %v1268_v1  ;;  %v314_v17 = vsel %vm219_vm1, %v312_v9, %v311_v8  ;;  %v317_v18 = vsel %vm224_vm2, %v315_v10, %v316_v11  ;;  %p1000_p12 = scmp.ne.s32.totalorder %s1587_s28, %s999_s23  ;;  %p1641_p0 = scmp.ne.s32.totalorder %s1636_s21, 0 }
  0x53   : > { %vm214_vm3 = vcmp.eq.s32.totalorder %v1273_v2, 15  ;;  %v319_v21 = vadd.f32 %v314_v17, %v1275_v3  ;;  %v325_v22 = vrot.slane %v323_v13, 1  ;;  %v221_v23 = vsel %vm219_vm1, %v218_v15, %v217_v14  ;;  %s1077_s13 = smov [#allocation7]  }
  0x54   : > { %v313_v24 = vsel %vm219_vm1, %v311_v8, %v312_v9  ;;  %v225_v25 = vsel %vm224_vm2, %v222_v16, %v223_v19  ;;  %v227_v26 = vadd.f32 %v221_v23, %v1283_v6  ;;  %v233_v27 = vrot.slane %v231_v20, 1  ;;  %p1001_p2 = pnand %p1000_p12, %p1641_p0  ;;  %s1003_s25 = sshll.u32 %s1077_s13, 4  ;;  %s1004_s25 = int_to_ptr.vmem [resolvable:$false] %s1003_s25 }
  0x55   : > { %v318_v28 = vsel %vm224_vm2, %v316_v11, %v315_v10  ;;  %v321_v29 = vadd.f32 %v319_v21, %v317_v18  ;;  %v327_v30 = vadd.f32 %v325_v22, %v1275_v3  ;;  %v320_v31 = vadd.f32 %v313_v24, %v1277_v4  ;;  %s1005_s7 = scalar_lea.vmem %s1004_s25, 512  ;;  %p1006_p9 = scmp.lt.s32.totalorder %s1587_s28, %s1004_s25 }
  0x56   : > { %v229_v33 = vadd.f32 %v227_v26, %v225_v25  ;;  %v235_v34 = vadd.f32 %v233_v27, %v1283_v6  ;;  %v220_v35 = vsel %vm219_vm1, %v217_v14, %v218_v15  ;;  %v226_v36 = vsel %vm224_vm2, %v223_v19, %v222_v16  ;;  %p1002_p7 = pneg %p1001_p2  ;;  %p1007_p13 = scmp.lt.s32.totalorder %s1005_s7, %s999_s23 }
  0x57   : > { %v331_v37 = vrot.slane %v327_v30, %v1281_v5  ;;  %v322_v38 = vadd.f32 %v320_v31, %v318_v28  ;;  %v336_v39 = vrot.slane %v334_v32, 7  ;;  %v228_v40 = vadd.f32 %v220_v35, %v1292_v12 }
  0x58   : > { %v239_v41 = vrot.slane %v235_v34, %v1281_v5  ;;  %v242_v42 = vmul.f32 2.0, %v1292_v12  ;;  %v409_v43 = vmul.f32 %v1283_v6, %v1283_v6  ;;  %v410_v44 = vmul.f32 %v1292_v12, %v1292_v12  ;;  %p1008_p1 = por %p1007_p13, %p1006_p9 }
  0x59   : > { %v1333_v45 = vsel %vm211_vm0, %v331_v37, %v321_v29  ;;  %v338_v46 = vadd.f32 %v336_v39, %v1277_v4  ;;  %v230_v47 = vadd.f32 %v228_v40, %v226_v36  ;;  %v1338_v48 = vmul.f32 %v1275_v3, %v1275_v3 }
  0x5a   : > { %v1341_v49 = vmul.f32 2.0, %v1333_v45  ;;  %v1345_v50 = vsel %vm211_vm0, %v239_v41, %v229_v33  ;;  %v244_v51 = vrot.slane %v242_v42, 7  ;;  %v411_v52 = vrot.slane %v409_v43, 7  ;;  %p1009_p3 = pnand %p1008_p1, %p1002_p7 }
  0x5b   : > { %v265_v53 = vmul.f32 2.0, %v1345_v50  ;;  %v342_v54 = vrot.slane %v338_v46, %v1286_v7  ;;  %v412_v55 = vrot.slane %v410_v44, 7  ;;  %v415_v56 = vrot.slane %v409_v43, 1 }
  0x5c   : > { %361 = vrot.lane.b32.xlu1 %v1341_v49, %s1073_s20  ;;  %v246_v57 = vadd.f32 %v244_v51, %v1292_v12  ;;  %v416_v58 = vrot.slane %v410_v44, 1  ;;  %v434_v59 = vmul.f32 2.0, %v410_v44  ;;  %v423_v60 = vmul.f32 2.0, %v409_v43 }
  0x5d   : > { %269 = vrot.lane.b32.xlu0 %v265_v53, %s1073_s20  ;;  %v1355_v61 = vsel %vm214_vm3, %v342_v54, %v322_v38  ;;  %v413_v62 = vsel %vm219_vm1, %v411_v52, %v412_v55  ;;  %v414_v63 = vsel %vm219_vm1, %v412_v55, %v411_v52  ;;  %v506_v8 = vmul.f32 %v1277_v4, %v1277_v4 }
  0x5e   : > { %v358_v9 = vmul.f32 2.0, %v1355_v61  ;;  %v250_v10 = vrot.slane %v246_v57, %v1286_v7  ;;  %v418_v11 = vsel %vm224_vm2, %v416_v58, %v415_v56  ;;  %v420_v13 = vadd.f32 %v413_v62, %v410_v44 }
  0x5f   : > { %v436_v14 = vrot.slane %v434_v59, 7  ;;  %v419_v15 = vadd.f32 %v414_v63, %v409_v43  ;;  %v425_v16 = vrot.slane %v423_v60, 1  ;;  %v417_v18 = vsel %vm224_vm2, %v415_v56, %v416_v58 }
  0x60   : > { %363 = vrot.lane.b32.xlu1 %v358_v9, %s1073_s20  ;;  %v1370_v17 = vsel %vm214_vm3, %v250_v10, %v230_v47  ;;  %v507_v19 = vrot.slane %v1338_v48, 7  ;;  %v508_v20 = vrot.slane %v506_v8, 7  ;;  %v422_v22 = vadd.f32 %v420_v13, %v418_v11 }
  0x61   : > { %v266_v21 = vmul.f32 2.0, %v1370_v17  ;;  %v438_v23 = vadd.f32 %v436_v14, %v410_v44  ;;  %v427_v24 = vadd.f32 %v425_v16, %v409_v43  ;;  %v511_v26 = vrot.slane %v1338_v48, 1 }
  0x62   : > { %v509_v25 = vsel %vm219_vm1, %v507_v19, %v508_v20  ;;  %v512_v27 = vrot.slane %v506_v8, 1  ;;  %v530_v28 = vmul.f32 2.0, %v506_v8  ;;  %v421_v30 = vadd.f32 %v419_v15, %v417_v18 }
  0x63   : > { %271 = vrot.lane.b32.xlu0 %v266_v21, %s1073_s20  ;;  %v442_v29 = vrot.slane %v438_v23, %v1286_v7  ;;  %v516_v31 = vadd.f32 %v509_v25, %v506_v8  ;;  %v510_v32 = vsel %vm219_vm1, %v508_v20, %v507_v19  ;;  %v431_v33 = vrot.slane %v427_v24, %v1281_v5 }
  0x64   : > { %291 = vrot.lane.b32.xlu1 %v266_v21, %s1074_s6  ;;  %v514_v34 = vsel %vm224_vm2, %v512_v27, %v511_v26  ;;  %v532_v35 = vrot.slane %v530_v28, 7  ;;  %v515_v36 = vadd.f32 %v510_v32, %v1338_v48  ;;  %v513_v38 = vsel %vm224_vm2, %v511_v26, %v512_v27 }
  0x65   : > { %v1390_v37 = vsel %vm214_vm3, %v442_v29, %v422_v22  ;;  %v519_v39 = vmul.f32 2.0, %v1338_v48  ;;  %v518_v40 = vadd.f32 %v516_v31, %v514_v34  ;;  %v601_v43 = vmul.f32 %v1275_v3, %v1283_v6 }
  0x66   : > { %v534_v41 = vadd.f32 %v532_v35, %v506_v8  ;;  %v602_v44 = vmul.f32 %v1277_v4, %v1292_v12  ;;  %v458_v46 = vmul.f32 2.0, %v1390_v37  ;;  %v1404_v47 = vsel %vm211_vm0, %v431_v33, %v421_v30 }
  0x67   : > { %289 = vrot.lane.b32.xlu0 %v265_v53, %s1074_s6  ;;  %v521_v42 = vrot.slane %v519_v39, 1  ;;  %v517_v52 = vadd.f32 %v515_v36, %v513_v38  ;;  %v1075_v54 = vmov 0   ;;  %v603_v3 = vrot.slane %v601_v43, 7 }
  0x68   : > { %383 = vrot.lane.b32.xlu1 %v358_v9, %s1074_s6  ;;  %v538_v51 = vrot.slane %v534_v41, %v1286_v7  ;;  %927 = vset.pattern.permute.xlu0 %v1075_v54  ;;  %v604_v6 = vrot.slane %v602_v44, 7  ;;  %v607_v55 = vrot.slane %v601_v43, 1  ;;  %v608_v12 = vrot.slane %v602_v44, 1 }
  0x69   : > { %v523_v53 = vadd.f32 %v521_v42, %v1338_v48  ;;  %928 = vset.pattern.permute.xlu1 %v1075_v54  ;;  %v626_v56 = vmul.f32 2.0, %v602_v44  ;;  %v615_v57 = vmul.f32 2.0, %v601_v43  ;;  %v457_v58 = vmul.f32 2.0, %v1404_v47 }
  0x6a   : > { %v1412_v4 = vsel %vm214_vm3, %v538_v51, %v518_v40  ;;  %v605_v48 = vsel %vm219_vm1, %v603_v3, %v604_v6  ;;  %v610_v10 = vsel %vm224_vm2, %v608_v12, %v607_v55  ;;  %v609_v19 = vsel %vm224_vm2, %v607_v55, %v608_v12 }
  0x6b   : > { %381 = vrot.lane.b32.xlu0 %v1341_v49, %s1074_s6  ;;  %v527_v59 = vrot.slane %v523_v53, %v1281_v5  ;;  %v554_v60 = vmul.f32 2.0, %v1412_v4  ;;  %v628_v62 = vrot.slane %v626_v56, 7  ;;  %v612_v8 = vadd.f32 %v605_v48, %v602_v44 }
  0x6c   : > { %463 = vrot.lane.b32.xlu1 %v458_v46, %s1073_s20  ;;  %v606_v49 = vsel %vm219_vm1, %v604_v6, %v603_v3  ;;  %v617_v9 = vrot.slane %v615_v57, 1  ;;  %v1076_v33 = vmov 127  }
  0x6d   : > { %v1424_v63 = vsel %vm211_vm0, %v527_v59, %v517_v52  ;;  %v630_v11 = vadd.f32 %v628_v62, %v602_v44  ;;  %v611_v14 = vadd.f32 %v606_v49, %v601_v43  ;;  %v614_v16 = vadd.f32 %v612_v8, %v610_v10 }
  0x6e   : > { %v553_v13 = vmul.f32 2.0, %v1424_v63  ;;  %v619_v15 = vadd.f32 %v617_v9, %v601_v43 }
  0x6f   : > { %461 = vrot.lane.b32.xlu0 %v457_v58, %s1073_s20  ;;  %v634_v18 = vrot.slane %v630_v11, %v1286_v7  ;;  %v613_v20 = vadd.f32 %v611_v14, %v609_v19 }
  0x70   : > { %559 = vrot.lane.b32.xlu1 %v554_v60, %s1073_s20  ;;  %v623_v21 = vrot.slane %v619_v15, %v1281_v5 }
  0x71   : > { %v1441_v22 = vsel %vm214_vm3, %v634_v18, %v614_v16 }
  0x72   : > { %v650_v7 = vmul.f32 2.0, %v1441_v22  ;;  %v1448_v23 = vsel %vm211_vm0, %v623_v21, %v613_v20 }
  0x73   : > { %557 = vrot.lane.b32.xlu0 %v553_v13, %s1073_s20  ;;  %v649_v24 = vmul.f32 2.0, %v1448_v23 }
  0x74   : > { %483 = vrot.lane.b32.xlu1 %v458_v46, %s1074_s6 }
  0x77   : > { %481 = vrot.lane.b32.xlu0 %v457_v58, %s1074_s6 }
  0x78   : > { %579 = vrot.lane.b32.xlu1 %v554_v60, %s1074_s6 }
  0x7b   : > { %577 = vrot.lane.b32.xlu0 %v553_v13, %s1074_s6 }
  0x7c   : > { %655 = vrot.lane.b32.xlu1 %v650_v7, %s1073_s20 }
  0x7f   : > { %653 = vrot.lane.b32.xlu0 %v649_v24, %s1073_s20 }
  0x80   : > { %675 = vrot.lane.b32.xlu1 %v650_v7, %s1074_s6 }
  0x83   : > { %673 = vrot.lane.b32.xlu0 %v649_v24, %s1074_s6 }
  0x84   : > { %255 = vrot.lane.b32.xlu1 %v1370_v17, %s1074_s6 }
  0x87   : > { %253 = vrot.lane.b32.xlu0 %v1345_v50, %s1074_s6 }
  0x88   : > { %259 = vrot.lane.b32.xlu1 %v1370_v17, %s1073_s20 }
  0x8b   : > { %257 = vrot.lane.b32.xlu0 %v1345_v50, %s1073_s20 }
  0x8c   : > { %345 = vrot.lane.b32.xlu1 %v1333_v45, %s1074_s6 }
  0x8f   : > { %351 = vrot.lane.b32.xlu0 %v1355_v61, %s1073_s20 }
  0x90   : > { %347 = vrot.lane.b32.xlu1 %v1355_v61, %s1074_s6 }
  0x93   : > { %447 = vrot.lane.b32.xlu0 %v1390_v37, %s1074_s6 }
  0x94   : > { %349 = vrot.lane.b32.xlu1 %v1333_v45, %s1073_s20 }
  0x97   : > { %449 = vrot.lane.b32.xlu0 %v1404_v47, %s1073_s20 }
  0x98   : > { %445 = vrot.lane.b32.xlu1 %v1404_v47, %s1074_s6 }
  0x9b   : > { %545 = vrot.lane.b32.xlu0 %v1424_v63, %s1073_s20 }
  0x9c   : > { %541 = vrot.lane.b32.xlu1 %v1424_v63, %s1074_s6 }
  0xa0   : > { %543 = vrot.lane.b32.xlu1 %v1412_v4, %s1074_s6 }
  0xa4   : > { %451 = vrot.lane.b32.xlu1 %v1390_v37, %s1073_s20 }
  0xce   : > { %v362_v1 = vpop.permute.xlu1 %361 }
  0xcf   : > { %v270_v2 = vpop.permute.xlu0 %269  ;;  %v367_v32 = vadd.f32 %v362_v1, %v1333_v45 }
  0xd0   : > { %v275_v5 = vadd.f32 %v270_v2, %v1345_v50 }
  0xd2   : > { %279 = vperm.xlu0 %927, %v275_v5   ;;  %v364_v25 = vpop.permute.xlu1 %363 }
  0xd3   : > { %v368_v26 = vadd.f32 %v364_v25, %v1355_v61 }
  0xd5   : > { %v272_v27 = vpop.permute.xlu0 %271 }
  0xd6   : > { %v276_v28 = vadd.f32 %v272_v27, %v1370_v17  ;;  %376 = vperm.xlu0 %927, %v368_v26   ;;  %v292_v29 = vpop.permute.xlu1 %291 }
  0xd7   : > { %v296_v30 = vadd.f32 %v292_v29, %v1370_v17 }
  0xd8   : > { %284 = vperm.xlu1 %928, %v276_v28  }
  0xd9   : > { %v290_v31 = vpop.permute.xlu0 %289 }
  0xda   : > { %930 = vset.pattern.permute.xlu0 %v1076_v33  ;;  %v384_v34 = vpop.permute.xlu1 %383  ;;  %v295_v35 = vadd.f32 %v290_v31, %v1345_v50 }
  0xdb   : > { %304 = vperm.xlu0 %930, %v296_v30   ;;  %v388_v40 = vadd.f32 %v384_v34, %v1355_v61 }
  0xdc   : > { %371 = vperm.xlu1 %928, %v367_v32   ;;  %v1521_v32 = vand.u32 127, %v206_v0 }
  0xdd   : > { %v382_v36 = vpop.permute.xlu0 %381 }
  0xde   : > { %v387_v38 = vadd.f32 %v382_v36, %v1333_v45  ;;  %v464_v39 = vpop.permute.xlu1 %463  ;;  %vm215_vm4 = vcmp.eq.s32.totalorder %v1521_v32, 0  ;;  %vm216_vm5 = vcmp.eq.s32.totalorder %v1521_v32, 127 }
  0xdf   : > { %v468_v51 = vadd.f32 %v464_v39, %v1390_v37 }
  0xe0   : > { %929 = vset.pattern.permute.xlu1 %v1076_v33  ;;  %391 = vperm.xlu0 %930, %v387_v38  }
  0xe1   : > { %299 = vperm.xlu1 %929, %v295_v35   ;;  %v462_v41 = vpop.permute.xlu0 %461 }
  0xe2   : > { %v467_v42 = vadd.f32 %v462_v41, %v1404_v47  ;;  %v560_v43 = vpop.permute.xlu1 %559 }
  0xe3   : > { %v564_v44 = vadd.f32 %v560_v43, %v1412_v4 }
  0xe4   : > { %931 = vset.pattern.permute.xlu0 %v1075_v54 }
  0xe5   : > { %396 = vperm.xlu1 %929, %v388_v40   ;;  %471 = vperm.xlu0 %931, %v467_v42   ;;  %v558_v46 = vpop.permute.xlu0 %557 }
  0xe6   : > { %v484_v52 = vpop.permute.xlu1 %483  ;;  %v563_v3 = vadd.f32 %v558_v46, %v1424_v63 }
  0xe7   : > { %v488_v6 = vadd.f32 %v484_v52, %v1390_v37 }
  0xe9   : > { %932 = vset.pattern.permute.xlu1 %v1075_v54  ;;  %572 = vperm.xlu0 %931, %v564_v44   ;;  %v482_v53 = vpop.permute.xlu0 %481 }
  0xea   : > { %476 = vperm.xlu1 %932, %v468_v51   ;;  %v487_v56 = vadd.f32 %v482_v53, %v1404_v47  ;;  %v580_v57 = vpop.permute.xlu1 %579 }
  0xeb   : > { %v584_v58 = vadd.f32 %v580_v57, %v1412_v4 }
  0xed   : > { %934 = vset.pattern.permute.xlu0 %v1076_v33  ;;  %v578_v55 = vpop.permute.xlu0 %577 }
  0xee   : > { %567 = vperm.xlu1 %932, %v563_v3   ;;  %496 = vperm.xlu0 %934, %v488_v6   ;;  %v583_v12 = vadd.f32 %v578_v55, %v1424_v63  ;;  %v656_v48 = vpop.permute.xlu1 %655 }
  0xef   : > { %v660_v49 = vadd.f32 %v656_v48, %v1441_v22 }
  0xf1   : > { %v654_v59 = vpop.permute.xlu0 %653 }
  0xf2   : > { %933 = vset.pattern.permute.xlu1 %v1076_v33  ;;  %587 = vperm.xlu0 %934, %v583_v12   ;;  %v659_v60 = vadd.f32 %v654_v59, %v1448_v23  ;;  %v676_v62 = vpop.permute.xlu1 %675 }
  0xf3   : > { %491 = vperm.xlu1 %933, %v487_v56   ;;  %v680_v8 = vadd.f32 %v676_v62, %v1441_v22 }
  0xf5   : > { %v674_v9 = vpop.permute.xlu0 %673 }
  0xf6   : > { %639 = vrot.lane.b32.xlu0 %v1441_v22, %s1074_s6  ;;  %v679_v10 = vadd.f32 %v674_v9, %v1448_v23 }
  0xf7   : > { %592 = vperm.xlu1 %933, %v584_v58   ;;  %935 = vset.pattern.permute.xlu0 %v1075_v54 }
  0xf9   : > { %v254_v13 = vpop.permute.xlu0 %253 }
  0xfa   : > { %663 = vperm.xlu0 %935, %v659_v60   ;;  %v261_v34 = vadd.f32 %v254_v13, %v1345_v50 }
  0xfb   : > { %547 = vrot.lane.b32.xlu1 %v1412_v4, %s1073_s20 }
  0xfc   : > { %936 = vset.pattern.permute.xlu1 %v1075_v54  ;;  %v256_v54 = vpop.permute.xlu1 %255 }
  0xfd   : > { %v258_v15 = vpop.permute.xlu0 %257  ;;  %v262_v12 = vadd.f32 %v256_v54, %v1370_v17 }
  0xfe   : > { %938 = vset.pattern.permute.xlu0 %v1076_v33  ;;  %v263_v39 = vadd.f32 %v261_v34, %v258_v15 }
  0xff   : > { %637 = vrot.lane.b32.xlu1 %v1448_v23, %s1074_s6  ;;  %688 = vperm.xlu0 %938, %v680_v8  }
 0x100   : > { %v260_v11 = vpop.permute.xlu1 %259 }
 0x101   : > { %v352_v18 = vpop.permute.xlu0 %351 }
 0x103   : > { %668 = vperm.xlu1 %936, %v660_v49   ;;  %v264_v49 = vadd.f32 %v262_v12, %v260_v11 }
 0x104   : > { %v346_v14 = vpop.permute.xlu1 %345 }
 0x105   : > { %v448_v20 = vpop.permute.xlu0 %447 }
 0x106   : > { %v454_v60 = vadd.f32 %v448_v20, %v1390_v37 }
 0x107   : > { %937 = vset.pattern.permute.xlu1 %v1076_v33  ;;  %v353_v33 = vadd.f32 %v346_v14, %v1333_v45 }
 0x108   : > { %683 = vperm.xlu1 %937, %v679_v10   ;;  %v348_v16 = vpop.permute.xlu1 %347 }
 0x109   : > { %v450_v7 = vpop.permute.xlu0 %449  ;;  %v354_v3 = vadd.f32 %v348_v16, %v1355_v61 }
 0x10b   : > { %v356_v61 = vadd.f32 %v354_v3, %v352_v18 }
 0x10c   : > { %641 = vrot.lane.b32.xlu1 %v1448_v23, %s1073_s20  ;;  %v350_v19 = vpop.permute.xlu1 %349 }
 0x10d   : > { %v546_v1 = vpop.permute.xlu0 %545  ;;  %v355_v38 = vadd.f32 %v353_v33, %v350_v19 }
 0x110   : > { %643 = vrot.lane.b32.xlu1 %v1441_v22, %s1073_s20  ;;  %v446_v21 = vpop.permute.xlu1 %445 }
 0x111   : > { %v453_v44 = vadd.f32 %v446_v21, %v1404_v47 }
 0x113   : > { %v455_v55 = vadd.f32 %v453_v44, %v450_v7 }
 0x114   : > { %v542_v24 = vpop.permute.xlu1 %541 }
 0x115   : > { %v549_v0 = vadd.f32 %v542_v24, %v1424_v63 }
 0x117   : > { %v551_v6 = vadd.f32 %v549_v0, %v546_v1 }
 0x118   : > { %v544_v2 = vpop.permute.xlu1 %543 }
 0x119   : > { %v550_v11 = vadd.f32 %v544_v2, %v1412_v4 }
 0x11c   : > { %v452_v25 = vpop.permute.xlu1 %451 }
 0x11d   : > { %v456_v16 = vadd.f32 %v454_v60, %v452_v25 }
 0x14d   : > { %v280_v5 = vpop.permute.xlu0 %279 }
 0x14e   : > { %v287_v42 = vsel %vm215_vm4, %v280_v5, %v263_v39 }
 0x151   : > { %v377_v26 = vpop.permute.xlu0 %376 }
 0x152   : > { %v380_v9 = vsel %vm215_vm4, %v377_v26, %v356_v61 }
 0x153   : > { %v285_v27 = vpop.permute.xlu1 %284 }
 0x154   : > { %v288_v37 = vsel %vm215_vm4, %v285_v27, %v264_v49 }
 0x156   : > { %v305_v28 = vpop.permute.xlu0 %304 }
 0x157   : > { %v372_v29 = vpop.permute.xlu1 %371  ;;  %v308_v18 = vsel %vm216_vm5, %v305_v28, %v288_v37 }
 0x158   : > { %v379_v43 = vsel %vm215_vm4, %v372_v29, %v355_v38  ;;  %v310_v25 = vmul.f32 0.11111111, %v308_v18 }
 0x15b   : > { %v392_v30 = vpop.permute.xlu0 %391 }
 0x15c   : > { %v300_v31 = vpop.permute.xlu1 %299  ;;  %v399_v50 = vsel %vm216_vm5, %v392_v30, %v379_v43 }
 0x15d   : > { %v307_v45 = vsel %vm216_vm5, %v300_v31, %v287_v42  ;;  %v401_v53 = vmul.f32 0.11111111, %v399_v50  ;;  %v404_v31 = vmul.f32 %v310_v25, %v310_v25 }
 0x15e   : > { %v1537_v52 = vmul.f32 0.11111111, %v307_v45 }
 0x15f   : > { %v405_v58 = vmul.f32 %v401_v53, %v401_v53 }
 0x160   : > { %v397_v35 = vpop.permute.xlu1 %396  ;;  %v472_v36 = vpop.permute.xlu0 %471  ;;  %v403_v57 = vmul.f32 %v1537_v52, %v1537_v52  ;;  %v407_v3 = vmul.f32 %v401_v53, %v1537_v52 }
 0x161   : > { %v479_v47 = vsel %vm215_vm4, %v472_v36, %v455_v55  ;;  %v400_v13 = vsel %vm216_vm5, %v397_v35, %v380_v9 }
 0x162   : > { %v707_v54 = vadd.f32 %v405_v58, %v403_v57  ;;  %v402_v20 = vmul.f32 0.11111111, %v400_v13 }
 0x164   : > { %v573_v40 = vpop.permute.xlu0 %572  ;;  %v709_v7 = vadd.f32 0.0001, %v707_v54  ;;  %v406_v27 = vmul.f32 %v402_v20, %v402_v20 }
 0x165   : > { %v477_v41 = vpop.permute.xlu1 %476 }
 0x166   : > { %v480_v21 = vsel %vm215_vm4, %v477_v41, %v456_v16  ;;  %v708_v34 = vadd.f32 %v406_v27, %v404_v31 }
 0x168   : > { %v710_v41 = vadd.f32 0.0001, %v708_v34 }
 0x169   : > { %v568_v46 = vpop.permute.xlu1 %567  ;;  %v497_v51 = vpop.permute.xlu0 %496 }
 0x16a   : > { %v575_v63 = vsel %vm215_vm4, %v568_v46, %v551_v6  ;;  %v500_v24 = vsel %vm216_vm5, %v497_v51, %v480_v21 }
 0x16b   : > { %v502_v30 = vmul.f32 0.11111111, %v500_v24 }
 0x16d   : > { %v588_v56 = vpop.permute.xlu0 %587  ;;  %v504_v35 = vsub.f32 %v502_v30, %v404_v31 }
 0x16e   : > { %v492_v59 = vpop.permute.xlu1 %491  ;;  %v595_v48 = vsel %vm216_vm5, %v588_v56, %v575_v63 }
 0x16f   : > { %v499_v17 = vsel %vm216_vm5, %v492_v59, %v479_v47  ;;  %v597_v62 = vmul.f32 0.11111111, %v595_v48  ;;  %v408_v59 = vmul.f32 %v402_v20, %v310_v25 }
 0x170   : > { %v501_v8 = vmul.f32 0.11111111, %v499_v17 }
 0x171   : > { %v599_v10 = vsub.f32 %v597_v62, %v405_v58  ;;  %v640_v43 = vpop.permute.xlu0 %639 }
 0x172   : > { %v503_v14 = vsub.f32 %v501_v8, %v403_v57  ;;  %v593_v15 = vpop.permute.xlu1 %592  ;;  %v646_v6 = vadd.f32 %v640_v43, %v1441_v22  ;;  %v698_v8 = vmul.f32 2.0, %v408_v59 }
 0x174   : > { %v711_v19 = vadd.f32 %v599_v10, %v503_v14  ;;  %v700_v16 = vadd.f32 0.0001, %v698_v8 }
 0x175   : > { %v664_v44 = vpop.permute.xlu0 %663 }
 0x176   : > { %v713_v1 = vadd.f32 0.0009, %v711_v19  ;;  %v548_v5 = vpop.permute.xlu1 %547 }
 0x177   : > { %v552_v26 = vadd.f32 %v550_v11, %v548_v5 }
 0x178   : > { %v715_v29 = vmul.f32 %v713_v1, %v709_v7 }
 0x179   : > { %v576_v28 = vsel %vm215_vm4, %v573_v40, %v552_v26 }
 0x17a   : > { %v596_v4 = vsel %vm216_vm5, %v593_v15, %v576_v28  ;;  %v638_v2 = vpop.permute.xlu1 %637  ;;  %939 = vrcp.f32 %v715_v29  ;;  %v689_v47 = vpop.permute.xlu0 %688 }
 0x17b   : > { %v598_v33 = vmul.f32 0.11111111, %v596_v4  ;;  %v645_v40 = vadd.f32 %v638_v2, %v1448_v23  ;;  %v697_v23 = vmul.f32 2.0, %v407_v3 }
 0x17d   : > { %v600_v36 = vsub.f32 %v598_v33, %v406_v27  ;;  %v699_v62 = vadd.f32 0.0001, %v697_v23 }
 0x17e   : > { %v669_v38 = vpop.permute.xlu1 %668 }
 0x17f   : > { %v712_v39 = vadd.f32 %v600_v36, %v504_v35 }
 0x181   : > { %v714_v42 = vadd.f32 0.0009, %v712_v39 }
 0x183   : > { %v716_v0 = vmul.f32 %v714_v42, %v710_v41  ;;  %v684_v45 = vpop.permute.xlu1 %683 }
 0x185   : > { %941 = vrcp.f32 %v716_v0 }
 0x187   : > { %v642_v50 = vpop.permute.xlu1 %641  ;;  %v940_v51 = vpop.eup %939 }
 0x188   : > { %v647_v46 = vadd.f32 %v645_v40, %v642_v50  ;;  %v719_v56 = vmul.f32 %v940_v51, %v715_v29 }
 0x18a   : > { %v671_v55 = vsel %vm215_vm4, %v664_v44, %v647_v46  ;;  %v721_v52 = vsub.f32 2.0, %v719_v56 }
 0x18b   : > { %v691_v12 = vsel %vm216_vm5, %v684_v45, %v671_v55  ;;  %v644_v63 = vpop.permute.xlu1 %643 }
 0x18c   : > { %v693_v57 = vmul.f32 0.11111111, %v691_v12  ;;  %v648_v58 = vadd.f32 %v646_v6, %v644_v63  ;;  %v723_v54 = vmul.f32 %v940_v51, %v721_v52 }
 0x18e   : > { %v695_v48 = vsub.f32 %v693_v57, %v407_v3  ;;  %v672_v61 = vsel %vm215_vm4, %v669_v38, %v648_v58 }
 0x18f   : > { %v692_v22 = vsel %vm216_vm5, %v689_v47, %v672_v61 }
 0x190   : > { %v701_v53 = vmul.f32 2.0, %v695_v48  ;;  %v694_v60 = vmul.f32 0.11111111, %v692_v22 }
 0x192   : > { %v942_v17 = vpop.eup %941  ;;  %v703_v49 = vadd.f32 0.0009, %v701_v53  ;;  %v696_v9 = vsub.f32 %v694_v60, %v408_v59 }
 0x193   : > { %v720_v10 = vmul.f32 %v942_v17, %v716_v0 }
 0x194   : > { %v705_v13 = vmul.f32 %v703_v49, %v699_v62  ;;  %v702_v14 = vmul.f32 2.0, %v696_v9 }
 0x195   : > { %v722_v15 = vsub.f32 2.0, %v720_v10 }
 0x196   : > { %v725_v37 = vmul.f32 %v723_v54, %v705_v13  ;;  %v704_v18 = vadd.f32 0.0009, %v702_v14 }
 0x197   : > { %v724_v32 = vmul.f32 %v942_v17, %v722_v15 }
 0x198   : > { %v727_v19 = vsub.f32 1.0, %v725_v37  ;;  %v706_v11 = vmul.f32 %v704_v18, %v700_v16 }
 0x19a   : > { %v729_v20 = vmul.f32 0.5, %v727_v19  ;;  %v726_v21 = vmul.f32 %v724_v32, %v706_v11 }
 0x19c   : > { %v731_v7 = vmax.f32 %v729_v20, 0.0  ;;  %v728_v24 = vsub.f32 1.0, %v726_v21 }
 0x19e   : > { %v733_v1 = vmin.f32 %v731_v7, 1.0  ;;  %v730_v5 = vmul.f32 0.5, %v728_v24 }
 0x1a0   : > { %v732_v25 = vmax.f32 %v730_v5, 0.0  ;;  %735 = vst [vmem:[%s201_s17] sm:$0xff] %v733_v1 }
 0x1a2   : > { %v734_v26 = vmin.f32 %v732_v25, 1.0 }
 0x1a4   : > { %736 = vst [vmem:[%s201_s17 + $0x8] sm:$0xff] %v734_v26 }
 0x1a5   : > { %1012 = shalt.err (!%p1009_p3)
}
 0x1a6   : > { %s1013_s8 = scalar_lea.hbm %s1585_s26, 256  ;;  %s1017_s3 = scalar_lea.hbm %s1631_s2, 2048 }
 0x1a7   : > { %p1014_p10 = scmp.ne.s32.totalorder %s1585_s26, %s1013_s8  ;;  %p1018_p5 = scmp.lt.s32.totalorder %s1585_s26, %s1631_s2 }
 0x1a8   : > { %p1019_p8 = scmp.lt.s32.totalorder %s1017_s3, %s1013_s8 }
 0x1a9   : > { %p1015_p11 = pnand %p1014_p10, %p1641_p0 }
 0x1aa   : > { %p1020_p6 = por %p1019_p8, %p1018_p5 }
 0x1ab   : > { %p1016_p4 = pneg %p1015_p11 }
 0x1ad   : > { %p1021_p12 = pnand %p1020_p6, %p1016_p4 }
 0x1af   : > { %1024 = shalt.err (!%p1021_p12)
}
 0x1b0   : > { %s1078_s20 = smov 128   ;;  %s1079_s6 = smov 8  }
 0x1b1   : > { %872 = dma.vmem_to_hbm [thread:$0]  (%p1641_p0), %s1587_s28, 256, %s1585_s26, %s738_s27, %s1078_s20, %s1078_s20, %s1079_s6  }
 0x1b2 PF: > { %p886_p2 = scmp.ge.s32.totalorder %s1067_s12, 2  ;;  %s766_s14 = sand.u32 1, %s1055_s9  }
 0x1b3   : > { %p1642_p7 = scmp.ne.s32.totalorder %s1637_s22, 0  ;;  %s767_s17 = scalar_lea.sflag [#allocation4], %s766_s14 }
 0x1b5   : > { %p882_p9 = pnand %p886_p2, %p1642_p7 }
 0x1b7   : > { %p883_p13 = pneg %p882_p9 }
 0x1b9   : > { %1050 = dma.done.wait (%p883_p13), %s767_s17, 256  }
 0x1ba   : > { %1052 = vsyncadd (%p883_p13), %s767_s17, 4294967040  ;;  %p18_p1 = scmp.ge.s32.totalorder %s1120_s15, 10   ;;  %s1643_s9 = smov %s1059_s10 }
 0x1bb   : > { %s1644_s10 = smov %s1063_s11  ;;  %s1645_s11 = smov %s1132_s18 }
 0x1bc   : > { %s1646_s12 = smov %s1120_s15  ;;  %20 = sbr.rel (!%p18_p1) target bundleno = 7 (0x7), region = 86 }
 0x1c1   :  { %772 = vsyncpa [#allocation3], 1 }
 0x1c2   :  { %774 = vsyncpa [#allocation3 + $0x1], 1 }
 0x1c3   :  { %775 = vsyncpa [#allocation6], 1 }
 0x1c4   :  { %777 = vsyncpa [#allocation6 + $0x1], 1 }
 0x1c5   :  { %778 = vsyncpa [#allocation4], 1 }
 0x1c6   :  { %780 = vsyncpa [#allocation4 + $0x1], 1 }

</bundles_post_ra>
